<compile_context>
chip_gen: v7x
topology: tpu7x:2x2x1
jax: 0.10.0
libtpu: 0.0.40
codegen_flags: <defaults>
</compile_context>

<pallas_src>
import functools

import jax
import jax.numpy as jnp
from jax import lax
from jax.experimental import pallas as pl
from jax.experimental.pallas import tpu as pltpu


# ----------------------------------------------------------------------------
# Kernel 1: per-batch raw reduction statistics (lane-dense layout)
# ----------------------------------------------------------------------------
def stats_kernel(pred_ref, gt_ref, mask_ref, out_ref):
    # pred_ref/gt_ref: (1, 3, H*W) f32 VMEM blocks (one batch element)
    # mask_ref:        (1, 1, H*W) f32 VMEM block
    # out_ref:         (B, 16)     f32 SMEM, resident across the batch grid
    b = pl.program_id(0)

    x = pred_ref[0]            # (3, HW)
    y = gt_ref[0]              # (3, HW)
    m = mask_ref[0]            # (1, HW)

    p = [x[c:c + 1, :] for c in range(3)]   # (1, HW) each
    g = [y[c:c + 1, :] for c in range(3)]

    dist_p = jnp.sqrt(p[0] * p[0] + p[1] * p[1] + p[2] * p[2])
    dist_g = jnp.sqrt(g[0] * g[0] + g[1] * g[1] + g[2] * g[2])

    out_ref[b, 0] = jnp.sum(m)                 # valid count
    out_ref[b, 1] = jnp.sum(dist_p * m)        # masked |pred| sum
    out_ref[b, 2] = jnp.sum(dist_g * m)        # masked |gt| sum
    for c in range(3):
        out_ref[b, 3 + c] = jnp.sum(p[c])            # sum p_c (all pixels)
        out_ref[b, 6 + c] = jnp.sum(g[c])            # sum g_c
        out_ref[b, 9 + c] = jnp.sum(p[c] * g[c])     # sum p_c*g_c
        out_ref[b, 12 + c] = jnp.sum(p[c] * p[c])    # sum p_c^2
    out_ref[b, 15] = jnp.float32(0.0)


# ----------------------------------------------------------------------------
# Kernel 2: fused alignment + main/reg loss + 3-scale normal/cosine loss
# ----------------------------------------------------------------------------
def _shift2d(x, dy, dx):
    """s[i, j] = x[i + dy, j + dx] if in range else 0 (zero padding)."""
    h, w = x.shape
    if dy > 0:
        x = jnp.concatenate([x[dy:, :], jnp.zeros((dy, w), x.dtype)], axis=0)
    elif dy < 0:
        x = jnp.concatenate([jnp.zeros((-dy, w), x.dtype), x[:h + dy, :]], axis=0)
    if dx > 0:
        x = jnp.concatenate([x[:, dx:], jnp.zeros((h, dx), x.dtype)], axis=1)
    elif dx < 0:
        x = jnp.concatenate([jnp.zeros((h, -dx), x.dtype), x[:, :w + dx]], axis=1)
    return x


def _cross(a, b):
    return [a[1] * b[2] - a[2] * b[1],
            a[2] * b[0] - a[0] * b[2],
            a[0] * b[1] - a[1] * b[0]]


def fused_loss_kernel(coef_ref, pred_ref, gt_ref, mask_ref, sigma_ref, out_ref,
                      *, steps):
    # coef_ref:  (B, 8) f32 SMEM: [scale/avg_p, 1/avg_g, shift0, shift1, shift2, 0,0,0]
    # pred_ref/gt_ref:    (1, 3, H, W) f32 VMEM blocks (one batch element)
    # mask_ref/sigma_ref: (1, H, W)    f32 VMEM blocks
    # out_ref: (B, 8) f32 SMEM; row b = [main_b, reg_b, cos_s0, cos_s1, cos_s2, 0,0,0]
    b = pl.program_id(0)

    a_p = coef_ref[b, 0]                                 # scale / avg_p[b]
    inv_g = coef_ref[b, 1]                               # 1 / avg_g[b]
    shift = [coef_ref[b, 2 + c] for c in range(3)]

    mask = mask_ref[0]                                   # (H, W)
    sigma = jnp.maximum(sigma_ref[0], 1e-6)

    pa = [pred_ref[0, c] * a_p + shift[c] for c in range(3)]   # aligned pred
    gn = [gt_ref[0, c] * inv_g for c in range(3)]              # normalized gt

    # sigma-weighted masked L1 main loss + log-sigma regularizer (partial sums)
    main_b = 0.0
    for c in range(3):
        main_b = main_b + jnp.sum(sigma * jnp.abs(pa[c] - gn[c]) * mask)
    reg_b = jnp.sum(jnp.log(sigma) * mask)

    out_ref[b, 0] = main_b
    out_ref[b, 1] = reg_b
    for i in range(2 + len(steps), 8):
        out_ref[b, i] = jnp.float32(0.0)

    # multi-scale point_map_to_normal + cosine similarity, fully in VMEM
    h, w = mask.shape
    row = lax.broadcasted_iota(jnp.int32, (h, w), 0)
    col = lax.broadcasted_iota(jnp.int32, (h, w), 1)

    def dirs(v, step):
        up = [_shift2d(v[c], -step, 0) - v[c] for c in range(3)]
        lf = [_shift2d(v[c], 0, -step) - v[c] for c in range(3)]
        dn = [_shift2d(v[c], step, 0) - v[c] for c in range(3)]
        rt = [_shift2d(v[c], 0, step) - v[c] for c in range(3)]
        return up, lf, dn, rt

    for si, step in enumerate(steps):
        p_up, p_lf, p_dn, p_rt = dirs(pa, step)
        g_up, g_lf, g_dn, g_rt = dirs(gn, step)
        p_norms = [_cross(p_up, p_lf), _cross(p_lf, p_dn),
                   _cross(p_dn, p_rt), _cross(p_rt, p_up)]
        g_norms = [_cross(g_up, g_lf), _cross(g_lf, g_dn),
                   _cross(g_dn, g_rt), _cross(g_rt, g_up)]

        if step > 1:
            # comb mask: only the positions of the ::step strided grid count
            sel = (jnp.logical_and(jnp.bitwise_and(row, step - 1) == 0,
                                   jnp.bitwise_and(col, step - 1) == 0)
                   ).astype(jnp.float32)
        else:
            sel = None

        cos_b = 0.0
        for k in range(4):
            cp, cg = p_norms[k], g_norms[k]
            dot = cp[0] * cg[0] + cp[1] * cg[1] + cp[2] * cg[2]
            np2 = jnp.maximum(cp[0] * cp[0] + cp[1] * cp[1] + cp[2] * cp[2], 1e-12)
            ng2 = jnp.maximum(cg[0] * cg[0] + cg[1] * cg[1] + cg[2] * cg[2], 1e-12)
            # == dot / (max(|cp|,1e-6) * max(|cg|,1e-6)): composition of
            # F.normalize(eps=1e-6) + cosine_similarity; single rsqrt on EUP.
            cos = dot * lax.rsqrt(np2 * ng2)
            if sel is not None:
                cos = cos * sel
            cos_b = cos_b + jnp.sum(cos)
        out_ref[b, 2 + si] = cos_b


# ----------------------------------------------------------------------------
# Wrapper
# ----------------------------------------------------------------------------
def depth_or_pmap_loss(pred, gt, sigma_p, sigma_g, valid_mask,
                       alpha=0.01, gamma=1.0, grad_scales=3, training=True):
    del sigma_g   # unused in the PyTorch forward (sigma = sigma_p)
    B, H, W, C = pred.shape
    assert C == 3, "only the point-map (C==3) path is implemented"
    assert grad_scales <= 6
    f32 = jnp.float32
    smem = pltpu.MemorySpace.SMEM

    maskf = valid_mask.astype(f32)
    sig = sigma_p.astype(f32)
    # channel-first so H (sublanes) / W (lanes) are the minor dims
    # TODO(synk): fold this transpose into the upstream producer of pred/gt.
    pcf = jnp.transpose(pred.astype(f32), (0, 3, 1, 2))      # (B, 3, H, W)
    gcf = jnp.transpose(gt.astype(f32), (0, 3, 1, 2))

    HW = H * W
    p_flat = pcf.reshape(B, 3, HW)     # lane-dense view for the reduction pass
    g_flat = gcf.reshape(B, 3, HW)
    m_flat = maskf.reshape(B, 1, HW)

    # --- pass 1: per-batch raw statistics -----------------------------------
    blk1 = (3 * HW * 2 + HW) * 4
    stats = pl.pallas_call(
        stats_kernel,
        out_shape=jax.ShapeDtypeStruct((B, 16), f32),
        grid=(B,),
        in_specs=[
            pl.BlockSpec((1, 3, HW), lambda b: (b, 0, 0)),
            pl.BlockSpec((1, 3, HW), lambda b: (b, 0, 0)),
            pl.BlockSpec((1, 1, HW), lambda b: (b, 0, 0)),
        ],
        out_specs=pl.BlockSpec((B, 16), lambda b: (0, 0), memory_space=smem),
        compiler_params=pltpu.CompilerParams(
            dimension_semantics=("arbitrary",),
            vmem_limit_bytes=int(min(max(8 * blk1, 4 << 20), 48 << 20))),
    )(p_flat, g_flat, m_flat)

    cnt = stats[:, 0]
    sdp = stats[:, 1]
    sdg = stats[:, 2]
    sp = stats[:, 3:6]
    sg = stats[:, 6:9]
    spg = stats[:, 9:12]
    spp = stats[:, 12:15]

    # normalize_pointcloud scalar math (eps = 1e-3), reciprocal multiplies
    if training:
        avg_p = jnp.clip(sdp / (cnt + 1e-3), 1e-3, 1000.0)
        avg_g = jnp.clip(sdg / (cnt + 1e-3), 1e-3, 1000.0)
        inv_p = 1.0 / avg_p
        inv_g = 1.0 / avg_g
    else:
        inv_p = jnp.ones((B,), f32)
        inv_g = jnp.ones((B,), f32)

    # closed_form_scale_and_shift (C==3 branch) from single-pass moments
    n_elems = float(B * H * W)
    sum_pn = jnp.sum(sp * inv_p[:, None], axis=0)                  # (3,)
    sum_gn = jnp.sum(sg * inv_g[:, None], axis=0)
    sum_pg = jnp.sum(spg * (inv_p * inv_g)[:, None], axis=0)
    sum_pp = jnp.sum(spp * (inv_p * inv_p)[:, None], axis=0)
    pm = sum_pn / n_elems
    gm = sum_gn / n_elems
    num = jnp.sum(sum_pg - n_elems * pm * gm)
    den = jnp.sum(sum_pp - n_elems * pm * pm)
    scale = num / jnp.maximum(den, 1e-6)
    shift = gm - scale * pm                                        # (3,)
    total_valid = jnp.sum(cnt)

    coef = jnp.concatenate(
        [(scale * inv_p)[:, None], inv_g[:, None],
         jnp.broadcast_to(shift, (B, 3)), jnp.zeros((B, 3), f32)], axis=1)

    # --- pass 2: fused alignment + main/reg/normal losses --------------------
    steps = tuple(2 ** s for s in range(grad_scales))
    blk2 = (3 * H * W * 2 + H * W * 2) * 4
    out2 = pl.pallas_call(
        functools.partial(fused_loss_kernel, steps=steps),
        out_shape=jax.ShapeDtypeStruct((B, 8), f32),
        grid=(B,),
        in_specs=[
            pl.BlockSpec((B, 8), lambda b: (0, 0), memory_space=smem),
            pl.BlockSpec((1, 3, H, W), lambda b: (b, 0, 0, 0)),
            pl.BlockSpec((1, 3, H, W), lambda b: (b, 0, 0, 0)),
            pl.BlockSpec((1, H, W), lambda b: (b, 0, 0)),
            pl.BlockSpec((1, H, W), lambda b: (b, 0, 0)),
        ],
        out_specs=pl.BlockSpec((B, 8), lambda b: (0, 0), memory_space=smem),
        compiler_params=pltpu.CompilerParams(
            dimension_semantics=("arbitrary",),
            vmem_limit_bytes=int(min(max(16 * blk2, 8 << 20), 48 << 20))),
    )(coef, pcf, gcf, maskf, sig)

    sums = jnp.sum(out2, axis=0)                         # (8,)
    main_loss = sums[0] / (3.0 * total_valid)
    reg_loss = -alpha * sums[1] / total_valid

    grad_loss = 0.0
    for si, step in enumerate(steps):
        hs = len(range(0, H, step))
        ws = len(range(0, W, step))
        grad_loss = grad_loss + (1.0 - sums[2 + si] / float(4 * B * hs * ws))
    grad_loss = grad_loss / float(len(steps))

    return gamma * main_loss + grad_loss + reg_loss


# ----------------------------------------------------------------------------
# Pure-JAX reference (mirrors the PyTorch module) for verification
# ----------------------------------------------------------------------------
def ref_loss(pred, gt, sigma_p, sigma_g, valid_mask,
             alpha=0.01, gamma=1.0, grad_scales=3, training=True):
    del sigma_g
    B, H, W, C = pred.shape
    maskf = valid_mask.astype(jnp.float32)

    def normalize_pc(pts):
        dist = jnp.linalg.norm(pts, axis=-1)
        dist_sum = jnp.sum(dist * maskf, axis=(1, 2))
        cnt = jnp.sum(maskf, axis=(1, 2))
        avg = jnp.clip(dist_sum / (cnt + 1e-3), 1e-3, 1000.0)
        return pts / avg[:, None, None, None]

    if training:
        pn, gnrm = normalize_pc(pred), normalize_pc(gt)
    else:
        pn, gnrm = pred, gt

    pf = pn.reshape(-1, C)
    gf = gnrm.reshape(-1, C)
    pm = pf.mean(0)
    gm = gf.mean(0)
    pc = pf - pm
    gc = gf - gm
    scale = jnp.sum(pc * gc) / jnp.maximum(jnp.sum(pc * pc), 1e-6)
    shift = gm - scale * pm
    pa = pn * scale + shift

    sigma = jnp.maximum(sigma_p, 1e-6)
    diff = jnp.abs(pa - gnrm)
    main = jnp.sum(sigma[..., None] * diff * maskf[..., None]) / (jnp.sum(maskf) * C)
    reg = -alpha * jnp.sum(jnp.log(sigma) * maskf) / jnp.sum(maskf)

    def raw_normals(pts):
        p = jnp.pad(pts, ((0, 0), (1, 1), (1, 1), (0, 0)))
        c = p[:, 1:-1, 1:-1]
        u = p[:, :-2, 1:-1]
        l = p[:, 1:-1, :-2]
        d = p[:, 2:, 1:-1]
        r = p[:, 1:-1, 2:]
        ud, ld, dd, rd = u - c, l - c, d - c, r - c
        return jnp.stack([jnp.cross(ud, ld), jnp.cross(ld, dd),
                          jnp.cross(dd, rd), jnp.cross(rd, ud)], axis=0)

    def normal_loss(a, b):
        na = raw_normals(a)
        nb = raw_normals(b)
        # F.normalize(eps=1e-6) followed by F.cosine_similarity composes to
        # dot / (max(|na|,1e-6) * max(|nb|,1e-6)); this form is well defined
        # at the degenerate (zero cross product) corner normals.
        dot = jnp.sum(na * nb, axis=-1)
        denom = (jnp.maximum(jnp.linalg.norm(na, axis=-1), 1e-6) *
                 jnp.maximum(jnp.linalg.norm(nb, axis=-1), 1e-6))
        return 1.0 - jnp.mean(dot / denom)

    g = 0.0
    for s in range(grad_scales):
        step = 2 ** s
        g = g + normal_loss(pa[:, ::step, ::step], gnrm[:, ::step, ::step])
    g = g / grad_scales
    return gamma * main + g + reg


if __name__ == "__main__":
    key = jax.random.PRNGKey(0)
    k1, k2, k3, k4, k5 = jax.random.split(key, 5)
    B, H, W, C = 2, 16, 16, 3
    pred = jax.random.normal(k1, (B, H, W, C), jnp.float32)
    gt = jax.random.normal(k2, (B, H, W, C), jnp.float32)
    sigma_p = jax.random.uniform(k3, (B, H, W), jnp.float32, 0.1, 1.0)
    sigma_g = jax.random.uniform(k4, (B, H, W), jnp.float32, 0.1, 1.0)
    valid_mask = jax.random.uniform(k5, (B, H, W)) > 0.2

    out = depth_or_pmap_loss(pred, gt, sigma_p, sigma_g, valid_mask)
    out = jax.block_until_ready(out)

    ref = jax.block_until_ready(ref_loss(pred, gt, sigma_p, sigma_g, valid_mask))
    assert bool(jnp.isfinite(out)), "kernel produced non-finite loss"
    tol = 2e-3 + 2e-3 * abs(float(ref))
    assert abs(float(out) - float(ref)) < tol, (float(out), float(ref))

    print("KERNEL_OK")
</pallas_src>

<mosaic_0001>
module attributes {stable_mosaic.version = 11 : i64} {
  func.func @stats_kernel(%arg0: i32, %arg1: memref<1x3x256xf32, #tpu.memory_space<vmem>>, %arg2: memref<1x3x256xf32, #tpu.memory_space<vmem>>, %arg3: memref<1x1x256xf32, #tpu.memory_space<vmem>>, %arg4: memref<2x16xf32, #tpu.memory_space<smem>>) attributes {dimension_semantics = [#tpu.dimension_semantics<arbitrary>], iteration_bounds = array<i64: 2>, scalar_prefetch = 0 : i64, scratch_operands = 0 : i64, tpu.core_type = #tpu.core_type<tc>, window_params = [{transform_indices = @transform_0, window_bounds = array<i64: 1, 3, 256>}, {transform_indices = @transform_1, window_bounds = array<i64: 1, 3, 256>}, {transform_indices = @transform_2, window_bounds = array<i64: 1, 1, 256>}, {transform_indices = @transform_3, window_bounds = array<i64: 2, 16>}]} {
    %c0 = arith.constant 0 : index
    %c0_0 = arith.constant 0 : index
    %c0_1 = arith.constant 0 : index
    %0 = vector.load %arg1[%c0, %c0_0, %c0_1] : memref<1x3x256xf32, #tpu.memory_space<vmem>>, vector<1x3x256xf32>
    %1 = vector.shape_cast %0 : vector<1x3x256xf32> to vector<3x256xf32>
    %c0_2 = arith.constant 0 : index
    %c0_3 = arith.constant 0 : index
    %c0_4 = arith.constant 0 : index
    %2 = vector.load %arg2[%c0_2, %c0_3, %c0_4] : memref<1x3x256xf32, #tpu.memory_space<vmem>>, vector<1x3x256xf32>
    %3 = vector.shape_cast %2 : vector<1x3x256xf32> to vector<3x256xf32>
    %c0_5 = arith.constant 0 : index
    %c0_6 = arith.constant 0 : index
    %c0_7 = arith.constant 0 : index
    %4 = vector.load %arg3[%c0_5, %c0_6, %c0_7] : memref<1x1x256xf32, #tpu.memory_space<vmem>>, vector<1x1x256xf32>
    %5 = vector.shape_cast %4 : vector<1x1x256xf32> to vector<1x256xf32>
    %6 = vector.extract_strided_slice %1 {offsets = [0, 0], sizes = [1, 256], strides = [1, 1]} : vector<3x256xf32> to vector<1x256xf32>
    %7 = vector.extract_strided_slice %1 {offsets = [1, 0], sizes = [1, 256], strides = [1, 1]} : vector<3x256xf32> to vector<1x256xf32>
    %8 = vector.extract_strided_slice %1 {offsets = [2, 0], sizes = [1, 256], strides = [1, 1]} : vector<3x256xf32> to vector<1x256xf32>
    %9 = vector.extract_strided_slice %3 {offsets = [0, 0], sizes = [1, 256], strides = [1, 1]} : vector<3x256xf32> to vector<1x256xf32>
    %10 = vector.extract_strided_slice %3 {offsets = [1, 0], sizes = [1, 256], strides = [1, 1]} : vector<3x256xf32> to vector<1x256xf32>
    %11 = vector.extract_strided_slice %3 {offsets = [2, 0], sizes = [1, 256], strides = [1, 1]} : vector<3x256xf32> to vector<1x256xf32>
    %12 = arith.mulf %6, %6 : vector<1x256xf32>
    %13 = arith.mulf %7, %7 : vector<1x256xf32>
    %14 = arith.addf %12, %13 : vector<1x256xf32>
    %15 = arith.mulf %8, %8 : vector<1x256xf32>
    %16 = arith.addf %14, %15 : vector<1x256xf32>
    %17 = math.sqrt %16 : vector<1x256xf32>
    %18 = arith.mulf %9, %9 : vector<1x256xf32>
    %19 = arith.mulf %10, %10 : vector<1x256xf32>
    %20 = arith.addf %18, %19 : vector<1x256xf32>
    %21 = arith.mulf %11, %11 : vector<1x256xf32>
    %22 = arith.addf %20, %21 : vector<1x256xf32>
    %23 = math.sqrt %22 : vector<1x256xf32>
    %24 = vector.shape_cast %5 : vector<1x256xf32> to vector<1x1x256xf32>
    %cst = arith.constant dense<0.000000e+00> : vector<1xf32>
    %25 = vector.multi_reduction <add>, %24, %cst [1, 2] : vector<1x1x256xf32> to vector<1xf32>
    %26 = vector.shape_cast %25 : vector<1xf32> to vector<1x1x1xf32>
    %27 = vector.extract %26[0, 0, 0] : f32 from vector<1x1x1xf32>
    %28 = arith.index_cast %arg0 : i32 to index
    %c0_8 = arith.constant 0 : index
    %29 = memref.load %arg4[%28, %c0_8] : memref<2x16xf32, #tpu.memory_space<smem>>
    memref.store %27, %arg4[%28, %c0_8] : memref<2x16xf32, #tpu.memory_space<smem>>
    %30 = arith.mulf %17, %5 : vector<1x256xf32>
    %31 = vector.shape_cast %30 : vector<1x256xf32> to vector<1x1x256xf32>
    %cst_9 = arith.constant dense<0.000000e+00> : vector<1xf32>
    %32 = vector.multi_reduction <add>, %31, %cst_9 [1, 2] : vector<1x1x256xf32> to vector<1xf32>
    %33 = vector.shape_cast %32 : vector<1xf32> to vector<1x1x1xf32>
    %34 = vector.extract %33[0, 0, 0] : f32 from vector<1x1x1xf32>
    %35 = arith.index_cast %arg0 : i32 to index
    %c1 = arith.constant 1 : index
    %36 = memref.load %arg4[%35, %c1] : memref<2x16xf32, #tpu.memory_space<smem>>
    memref.store %34, %arg4[%35, %c1] : memref<2x16xf32, #tpu.memory_space<smem>>
    %37 = arith.mulf %23, %5 : vector<1x256xf32>
    %38 = vector.shape_cast %37 : vector<1x256xf32> to vector<1x1x256xf32>
    %cst_10 = arith.constant dense<0.000000e+00> : vector<1xf32>
    %39 = vector.multi_reduction <add>, %38, %cst_10 [1, 2] : vector<1x1x256xf32> to vector<1xf32>
    %40 = vector.shape_cast %39 : vector<1xf32> to vector<1x1x1xf32>
    %41 = vector.extract %40[0, 0, 0] : f32 from vector<1x1x1xf32>
    %42 = arith.index_cast %arg0 : i32 to index
    %c2 = arith.constant 2 : index
    %43 = memref.load %arg4[%42, %c2] : memref<2x16xf32, #tpu.memory_space<smem>>
    memref.store %41, %arg4[%42, %c2] : memref<2x16xf32, #tpu.memory_space<smem>>
    %44 = vector.shape_cast %6 : vector<1x256xf32> to vector<1x1x256xf32>
    %cst_11 = arith.constant dense<0.000000e+00> : vector<1xf32>
    %45 = vector.multi_reduction <add>, %44, %cst_11 [1, 2] : vector<1x1x256xf32> to vector<1xf32>
    %46 = vector.shape_cast %45 : vector<1xf32> to vector<1x1x1xf32>
    %47 = vector.extract %46[0, 0, 0] : f32 from vector<1x1x1xf32>
    %48 = arith.index_cast %arg0 : i32 to index
    %c3 = arith.constant 3 : index
    %49 = memref.load %arg4[%48, %c3] : memref<2x16xf32, #tpu.memory_space<smem>>
    memref.store %47, %arg4[%48, %c3] : memref<2x16xf32, #tpu.memory_space<smem>>
    %50 = vector.shape_cast %9 : vector<1x256xf32> to vector<1x1x256xf32>
    %cst_12 = arith.constant dense<0.000000e+00> : vector<1xf32>
    %51 = vector.multi_reduction <add>, %50, %cst_12 [1, 2] : vector<1x1x256xf32> to vector<1xf32>
    %52 = vector.shape_cast %51 : vector<1xf32> to vector<1x1x1xf32>
    %53 = vector.extract %52[0, 0, 0] : f32 from vector<1x1x1xf32>
    %54 = arith.index_cast %arg0 : i32 to index
    %c6 = arith.constant 6 : index
    %55 = memref.load %arg4[%54, %c6] : memref<2x16xf32, #tpu.memory_space<smem>>
    memref.store %53, %arg4[%54, %c6] : memref<2x16xf32, #tpu.memory_space<smem>>
    %56 = arith.mulf %6, %9 : vector<1x256xf32>
    %57 = vector.shape_cast %56 : vector<1x256xf32> to vector<1x1x256xf32>
    %cst_13 = arith.constant dense<0.000000e+00> : vector<1xf32>
    %58 = vector.multi_reduction <add>, %57, %cst_13 [1, 2] : vector<1x1x256xf32> to vector<1xf32>
    %59 = vector.shape_cast %58 : vector<1xf32> to vector<1x1x1xf32>
    %60 = vector.extract %59[0, 0, 0] : f32 from vector<1x1x1xf32>
    %61 = arith.index_cast %arg0 : i32 to index
    %c9 = arith.constant 9 : index
    %62 = memref.load %arg4[%61, %c9] : memref<2x16xf32, #tpu.memory_space<smem>>
    memref.store %60, %arg4[%61, %c9] : memref<2x16xf32, #tpu.memory_space<smem>>
    %63 = arith.mulf %6, %6 : vector<1x256xf32>
    %64 = vector.shape_cast %63 : vector<1x256xf32> to vector<1x1x256xf32>
    %cst_14 = arith.constant dense<0.000000e+00> : vector<1xf32>
    %65 = vector.multi_reduction <add>, %64, %cst_14 [1, 2] : vector<1x1x256xf32> to vector<1xf32>
    %66 = vector.shape_cast %65 : vector<1xf32> to vector<1x1x1xf32>
    %67 = vector.extract %66[0, 0, 0] : f32 from vector<1x1x1xf32>
    %68 = arith.index_cast %arg0 : i32 to index
    %c12 = arith.constant 12 : index
    %69 = memref.load %arg4[%68, %c12] : memref<2x16xf32, #tpu.memory_space<smem>>
    memref.store %67, %arg4[%68, %c12] : memref<2x16xf32, #tpu.memory_space<smem>>
    %70 = vector.shape_cast %7 : vector<1x256xf32> to vector<1x1x256xf32>
    %cst_15 = arith.constant dense<0.000000e+00> : vector<1xf32>
    %71 = vector.multi_reduction <add>, %70, %cst_15 [1, 2] : vector<1x1x256xf32> to vector<1xf32>
    %72 = vector.shape_cast %71 : vector<1xf32> to vector<1x1x1xf32>
    %73 = vector.extract %72[0, 0, 0] : f32 from vector<1x1x1xf32>
    %74 = arith.index_cast %arg0 : i32 to index
    %c4 = arith.constant 4 : index
    %75 = memref.load %arg4[%74, %c4] : memref<2x16xf32, #tpu.memory_space<smem>>
    memref.store %73, %arg4[%74, %c4] : memref<2x16xf32, #tpu.memory_space<smem>>
    %76 = vector.shape_cast %10 : vector<1x256xf32> to vector<1x1x256xf32>
    %cst_16 = arith.constant dense<0.000000e+00> : vector<1xf32>
    %77 = vector.multi_reduction <add>, %76, %cst_16 [1, 2] : vector<1x1x256xf32> to vector<1xf32>
    %78 = vector.shape_cast %77 : vector<1xf32> to vector<1x1x1xf32>
    %79 = vector.extract %78[0, 0, 0] : f32 from vector<1x1x1xf32>
    %80 = arith.index_cast %arg0 : i32 to index
    %c7 = arith.constant 7 : index
    %81 = memref.load %arg4[%80, %c7] : memref<2x16xf32, #tpu.memory_space<smem>>
    memref.store %79, %arg4[%80, %c7] : memref<2x16xf32, #tpu.memory_space<smem>>
    %82 = arith.mulf %7, %10 : vector<1x256xf32>
    %83 = vector.shape_cast %82 : vector<1x256xf32> to vector<1x1x256xf32>
    %cst_17 = arith.constant dense<0.000000e+00> : vector<1xf32>
    %84 = vector.multi_reduction <add>, %83, %cst_17 [1, 2] : vector<1x1x256xf32> to vector<1xf32>
    %85 = vector.shape_cast %84 : vector<1xf32> to vector<1x1x1xf32>
    %86 = vector.extract %85[0, 0, 0] : f32 from vector<1x1x1xf32>
    %87 = arith.index_cast %arg0 : i32 to index
    %c10 = arith.constant 10 : index
    %88 = memref.load %arg4[%87, %c10] : memref<2x16xf32, #tpu.memory_space<smem>>
    memref.store %86, %arg4[%87, %c10] : memref<2x16xf32, #tpu.memory_space<smem>>
    %89 = arith.mulf %7, %7 : vector<1x256xf32>
    %90 = vector.shape_cast %89 : vector<1x256xf32> to vector<1x1x256xf32>
    %cst_18 = arith.constant dense<0.000000e+00> : vector<1xf32>
    %91 = vector.multi_reduction <add>, %90, %cst_18 [1, 2] : vector<1x1x256xf32> to vector<1xf32>
    %92 = vector.shape_cast %91 : vector<1xf32> to vector<1x1x1xf32>
    %93 = vector.extract %92[0, 0, 0] : f32 from vector<1x1x1xf32>
    %94 = arith.index_cast %arg0 : i32 to index
    %c13 = arith.constant 13 : index
    %95 = memref.load %arg4[%94, %c13] : memref<2x16xf32, #tpu.memory_space<smem>>
    memref.store %93, %arg4[%94, %c13] : memref<2x16xf32, #tpu.memory_space<smem>>
    %96 = vector.shape_cast %8 : vector<1x256xf32> to vector<1x1x256xf32>
    %cst_19 = arith.constant dense<0.000000e+00> : vector<1xf32>
    %97 = vector.multi_reduction <add>, %96, %cst_19 [1, 2] : vector<1x1x256xf32> to vector<1xf32>
    %98 = vector.shape_cast %97 : vector<1xf32> to vector<1x1x1xf32>
    %99 = vector.extract %98[0, 0, 0] : f32 from vector<1x1x1xf32>
    %100 = arith.index_cast %arg0 : i32 to index
    %c5 = arith.constant 5 : index
    %101 = memref.load %arg4[%100, %c5] : memref<2x16xf32, #tpu.memory_space<smem>>
    memref.store %99, %arg4[%100, %c5] : memref<2x16xf32, #tpu.memory_space<smem>>
    %102 = vector.shape_cast %11 : vector<1x256xf32> to vector<1x1x256xf32>
    %cst_20 = arith.constant dense<0.000000e+00> : vector<1xf32>
    %103 = vector.multi_reduction <add>, %102, %cst_20 [1, 2] : vector<1x1x256xf32> to vector<1xf32>
    %104 = vector.shape_cast %103 : vector<1xf32> to vector<1x1x1xf32>
    %105 = vector.extract %104[0, 0, 0] : f32 from vector<1x1x1xf32>
    %106 = arith.index_cast %arg0 : i32 to index
    %c8 = arith.constant 8 : index
    %107 = memref.load %arg4[%106, %c8] : memref<2x16xf32, #tpu.memory_space<smem>>
    memref.store %105, %arg4[%106, %c8] : memref<2x16xf32, #tpu.memory_space<smem>>
    %108 = arith.mulf %8, %11 : vector<1x256xf32>
    %109 = vector.shape_cast %108 : vector<1x256xf32> to vector<1x1x256xf32>
    %cst_21 = arith.constant dense<0.000000e+00> : vector<1xf32>
    %110 = vector.multi_reduction <add>, %109, %cst_21 [1, 2] : vector<1x1x256xf32> to vector<1xf32>
    %111 = vector.shape_cast %110 : vector<1xf32> to vector<1x1x1xf32>
    %112 = vector.extract %111[0, 0, 0] : f32 from vector<1x1x1xf32>
    %113 = arith.index_cast %arg0 : i32 to index
    %c11 = arith.constant 11 : index
    %114 = memref.load %arg4[%113, %c11] : memref<2x16xf32, #tpu.memory_space<smem>>
    memref.store %112, %arg4[%113, %c11] : memref<2x16xf32, #tpu.memory_space<smem>>
    %115 = arith.mulf %8, %8 : vector<1x256xf32>
    %116 = vector.shape_cast %115 : vector<1x256xf32> to vector<1x1x256xf32>
    %cst_22 = arith.constant dense<0.000000e+00> : vector<1xf32>
    %117 = vector.multi_reduction <add>, %116, %cst_22 [1, 2] : vector<1x1x256xf32> to vector<1xf32>
    %118 = vector.shape_cast %117 : vector<1xf32> to vector<1x1x1xf32>
    %119 = vector.extract %118[0, 0, 0] : f32 from vector<1x1x1xf32>
    %120 = arith.index_cast %arg0 : i32 to index
    %c14 = arith.constant 14 : index
    %121 = memref.load %arg4[%120, %c14] : memref<2x16xf32, #tpu.memory_space<smem>>
    memref.store %119, %arg4[%120, %c14] : memref<2x16xf32, #tpu.memory_space<smem>>
    %cst_23 = arith.constant 0.000000e+00 : f32
    %122 = arith.index_cast %arg0 : i32 to index
    %c15 = arith.constant 15 : index
    %123 = memref.load %arg4[%122, %c15] : memref<2x16xf32, #tpu.memory_space<smem>>
    memref.store %cst_23, %arg4[%122, %c15] : memref<2x16xf32, #tpu.memory_space<smem>>
    return
  }
  func.func @transform_0(%arg0: i32) -> (i32, i32, i32) {
    %c0_i32 = arith.constant 0 : i32
    %c0_i32_0 = arith.constant 0 : i32
    %c0_i32_1 = arith.constant 0 : i32
    return %arg0, %c0_i32, %c0_i32_0 : i32, i32, i32
  }
  func.func @transform_1(%arg0: i32) -> (i32, i32, i32) {
    %c0_i32 = arith.constant 0 : i32
    %c0_i32_0 = arith.constant 0 : i32
    %c0_i32_1 = arith.constant 0 : i32
    return %arg0, %c0_i32, %c0_i32_0 : i32, i32, i32
  }
  func.func @transform_2(%arg0: i32) -> (i32, i32, i32) {
    %c0_i32 = arith.constant 0 : i32
    %c0_i32_0 = arith.constant 0 : i32
    %c0_i32_1 = arith.constant 0 : i32
    return %arg0, %c0_i32, %c0_i32_0 : i32, i32, i32
  }
  func.func @transform_3(%arg0: i32) -> (i32, i32) {
    %c0_i32 = arith.constant 0 : i32
    %c0_i32_0 = arith.constant 0 : i32
    %c0_i32_1 = arith.constant 0 : i32
    return %c0_i32, %c0_i32_0 : i32, i32
  }
}

</mosaic_0001>

<bundles_post_ra>
// kernel: tpu_custom_call.1
= control target key start
LH: loop header
LB: loop body
LE: loop exit
PB: predicated region body
PF: predicated region fallthrough
CT: control target
= control target key end

     0   :  { %8 = vsyncpa [#allocation3], 0  ;;  %s876_s12 = smov 0   ;;  %s1063_s0 = inlined_call_operand.vmem [shape: f32[2,3,256], index: 0, kind: input, shape index: {}]   ;;  %s1064_s1 = inlined_call_operand.vmem [shape: f32[2,3,256], index: 1, kind: input, shape index: {}]   ;;  %s1065_s2 = inlined_call_operand.vmem [shape: f32[2,1,256], index: 2, kind: input, shape index: {}]   ;;  %s1066_s3 = inlined_call_operand.hbm [shape: f32[2,16], index: 3, kind: output, shape index: {}]  }
   0x1 LB: > { %s882_s13 = sadd.s32 4294967295, %s851_s12   ;;  %p746_p0 = scmp.ge.s32.totalorder %s851_s12, 1  ;;  %s851_s12 = sphi %s876_s12, %s14_s12  }
   0x2   : > { %p152_p1 = scmp.lt.s32.totalorder %s851_s12, 3 }
   0x4   : > { %p153_p2 = pnand %p746_p0, %p152_p1 }
   0x5   : > { %p180_p3 = scmp.lt.s32.totalorder (!%p153_p2), %s882_s13, 1  ;;  %v232_v0 = vlaneseq (!%p153_p2)  ;;  %vm242_vm0 = vcmask (!%p153_p2), 1040384   ;;  %s756_s26 = sshll.u32 (!%p153_p2), %s882_s13, 7 }
   0x6   : > { %156 = sbr.rel (%p153_p2) target bundleno = 291 (0x123), region = 32  ;;  %s1019_s27 = scalar_lea.smem (!%p153_p2), [#allocation2], %s756_s26 }
   0x7   : > { %v888_v1 = vshrl.u32 (!%p153_p2), %v232_v0, 7  ;;  %s713_s28 = scalar_lea.smem (!%p153_p2), %s1019_s27, 15 [#allocation2]  ;;  %s854_s29 = smov (!%p153_p2), 0.0  }
   0x8   : > { %626 = sst [smem:[%s713_s28]] (!%p153_p2), %s854_s29  ;;  %s671_s4 = scalar_lea.smem (!%p153_p2), %s1019_s27, 1 [#allocation2] }
   0x9   : > { %v891_v2 = vsub.s32 (!%p153_p2), 0, %v888_v1  ;;  %v894_v3 = vsub.s32 (!%p153_p2), 1, %v888_v1  ;;  %v897_v4 = vsub.s32 (!%p153_p2), 4, %v888_v1  ;;  %v430_v10 = vsub.s32 (!%p153_p2), 5, %v888_v1  ;;  %s674_s5 = scalar_lea.smem (!%p153_p2), %s1019_s27, 2 [#allocation2]  ;;  %s677_s6 = scalar_lea.smem (!%p153_p2), %s1019_s27, 3 [#allocation2] }
   0xa   : > { %v920_v11 = vsub.s32 (!%p153_p2), 2, %v888_v1  ;;  %v961_v39 = vsub.s32 (!%p153_p2), 6, %v888_v1  ;;  %s680_s7 = scalar_lea.smem (!%p153_p2), %s1019_s27, 6 [#allocation2]  ;;  %s683_s8 = scalar_lea.smem (!%p153_p2), %s1019_s27, 9 [#allocation2] }
   0xb   : > { %s686_s9 = scalar_lea.smem (!%p153_p2), %s1019_s27, 12 [#allocation2]  ;;  %s689_s10 = scalar_lea.smem (!%p153_p2), %s1019_s27, 4 [#allocation2] }
   0xc   : > { %s692_s11 = scalar_lea.smem (!%p153_p2), %s1019_s27, 7 [#allocation2]  ;;  %s704_s17 = scalar_lea.smem (!%p153_p2), %s1019_s27, 8 [#allocation2] }
   0xd   : > { %s181_s14 = scalar_select %p180_p3, %s882_s13, 1 }
   0xe   : > { %s707_s18 = scalar_lea.smem %s1019_s27, 11 [#allocation2]  ;;  %p812_p4 = scmp.eq.s32.totalorder %s882_s13, 1 }
   0xf   : > { %s751_s15 = sshll.u32 %s181_s14, 1  ;;  %s776_s16 = sshll.u32 %s181_s14, 3 }
  0x10   : > { %s193_s19 = scalar_lea.vmem %s1065_s2, %s751_s15  ;;  %s184_s22 = scalar_lea.vmem %s1063_s0, %s776_s16 }
  0x11   : > { %v905_v5 = vld [vmem:[%s193_s19] sm:$0x3]  ;;  %s189_s25 = scalar_lea.vmem %s1064_s1, %s776_s16  ;;  %s695_s14 = scalar_lea.smem %s1019_s27, 10 [#allocation2] }
  0x12   : > { %v910_v6 = vld [vmem:[%s184_s22] sm:$0x77]  ;;  %v235_v7 = vrot.slane %v905_v5, %v891_v2  ;;  %v239_v8 = vrot.slane %v905_v5, %v894_v3  ;;  %s698_s15 = scalar_lea.smem %s1019_s27, 13 [#allocation2]  ;;  %s701_s16 = scalar_lea.smem %s1019_s27, 5 [#allocation2] }
  0x13   : > { %v916_v9 = vld [vmem:[%s189_s25] sm:$0x77]  ;;  %v924_v12 = vmul.f32 %v910_v6, %v910_v6  ;;  %v324_v13 = vrot.slane %v910_v6, %v891_v2  ;;  %v328_v14 = vrot.slane %v910_v6, %v897_v4  ;;  %v427_v19 = vrot.slane %v910_v6, %v894_v3  ;;  %s710_s19 = scalar_lea.smem %s1019_s27, 14 [#allocation2] }
  0x14   : > { %v350_v15 = vrot.slane %v916_v9, %v891_v2  ;;  %v243_v16 = vsel %vm242_vm0, %v235_v7, 0.0  ;;  %v244_v17 = vsel %vm242_vm0, %v239_v8, 0.0  ;;  %v354_v18 = vrot.slane %v916_v9, %v897_v4 }
  0x15   : > { %v245_v20 = vadd.f32 %v244_v17, %v243_v16  ;;  %v214_v21 = vmul.f32 %v916_v9, %v916_v9  ;;  %v331_v22 = vsel %vm242_vm0, %v324_v13, 0.0  ;;  %v332_v23 = vsel %vm242_vm0, %v328_v14, 0.0 }
  0x16   : > { %v333_v24 = vadd.f32 %v332_v23, %v331_v22  ;;  %v357_v25 = vsel %vm242_vm0, %v350_v15, 0.0  ;;  %v358_v26 = vsel %vm242_vm0, %v354_v18, 0.0  ;;  %v431_v27 = vrot.slane %v910_v6, %v430_v10 }
  0x17   : > { %246 = vadd.xlane.f32.xlu0 %v245_v20  ;;  %v359_v28 = vadd.f32 %v358_v26, %v357_v25  ;;  %v434_v29 = vsel %vm242_vm0, %v427_v19, 0.0  ;;  %v452_v30 = vrot.slane %v916_v9, %v894_v3  ;;  %v456_v31 = vrot.slane %v916_v9, %v430_v10 }
  0x18   : > { %334 = vadd.xlane.f32.xlu1 %v333_v24  ;;  %v435_v32 = vsel %vm242_vm0, %v431_v27, 0.0  ;;  %v952_v33 = vmul.f32 %v916_v9, %v910_v6  ;;  %v402_v34 = vrot.slane %v924_v12, %v891_v2  ;;  %v406_v35 = vrot.slane %v924_v12, %v897_v4 }
  0x19   : > { %v436_v36 = vadd.f32 %v435_v32, %v434_v29  ;;  %v459_v37 = vsel %vm242_vm0, %v452_v30, 0.0  ;;  %v460_v38 = vsel %vm242_vm0, %v456_v31, 0.0  ;;  %v754_v40 = vrot.slane %v214_v21, 9 }
  0x1a   : > { %v377_v41 = vrot.slane %v952_v33, %v891_v2  ;;  %v381_v42 = vrot.slane %v952_v33, %v897_v4  ;;  %v477_v43 = vrot.slane %v952_v33, %v894_v3  ;;  %v461_v44 = vadd.f32 %v460_v38, %v459_v37 }
  0x1b   : > { %360 = vadd.xlane.f32.xlu0 %v359_v28  ;;  %v481_v45 = vrot.slane %v952_v33, %v430_v10  ;;  %v409_v46 = vsel %vm242_vm0, %v402_v34, 0.0  ;;  %v410_v47 = vsel %vm242_vm0, %v406_v35, 0.0  ;;  %v527_v53 = vrot.slane %v910_v6, %v920_v11 }
  0x1c   : > { %437 = vadd.xlane.f32.xlu1 %v436_v36  ;;  %v384_v48 = vsel %vm242_vm0, %v377_v41, 0.0  ;;  %v385_v49 = vsel %vm242_vm0, %v381_v42, 0.0  ;;  %v484_v50 = vsel %vm242_vm0, %v477_v43, 0.0  ;;  %v531_v54 = vrot.slane %v910_v6, %v961_v39 }
  0x1d   : > { %v386_v51 = vadd.f32 %v385_v49, %v384_v48  ;;  %v485_v52 = vsel %vm242_vm0, %v481_v45, 0.0  ;;  %v411_v56 = vadd.f32 %v410_v47, %v409_v46  ;;  %v502_v57 = vrot.slane %v924_v12, %v894_v3 }
  0x1e   : > { %v486_v55 = vadd.f32 %v485_v52, %v484_v50  ;;  %v506_v58 = vrot.slane %v924_v12, %v430_v10  ;;  %v552_v59 = vrot.slane %v916_v9, %v920_v11  ;;  %v556_v60 = vrot.slane %v916_v9, %v961_v39 }
  0x1f   : > { %462 = vadd.xlane.f32.xlu0 %v461_v44  ;;  %v219_v61 = vadd.f32 %v754_v40, %v214_v21  ;;  %v755_v62 = vrot.slane %v214_v21, 10  ;;  %v509_v63 = vsel %vm242_vm0, %v502_v57, 0.0  ;;  %v752_v6 = vrot.slane %v924_v12, 9 }
  0x20   : > { %387 = vadd.xlane.f32.xlu1 %v386_v51  ;;  %v510_v0 = vsel %vm242_vm0, %v506_v58, 0.0  ;;  %v753_v3 = vrot.slane %v924_v12, 10  ;;  %v534_v7 = vsel %vm242_vm0, %v527_v53, 0.0  ;;  %v535_v8 = vsel %vm242_vm0, %v531_v54, 0.0 }
  0x21   : > { %v223_v10 = vadd.f32 %v755_v62, %v219_v61  ;;  %v853_v13 = vmov 286326784   ;;  %v202_v9 = vadd.f32 %v752_v6, %v924_v12  ;;  %v511_v15 = vadd.f32 %v510_v0, %v509_v63 }
  0x22   : > { %v259_v14 = vunpack.c.l.s4 %v853_v13  ;;  %v536_v16 = vadd.f32 %v535_v8, %v534_v7  ;;  %v559_v17 = vsel %vm242_vm0, %v552_v59, 0.0  ;;  %v560_v18 = vsel %vm242_vm0, %v556_v60, 0.0 }
  0x23   : > { %412 = vadd.xlane.f32.xlu0 %v411_v56  ;;  %825 = vrsqrt.f32 %v223_v10  ;;  %v206_v19 = vadd.f32 %v753_v3, %v202_v9  ;;  %v561_v21 = vadd.f32 %v560_v18, %v559_v17  ;;  %vm226_vm1 = vcmp.eq.f32.partialorder %v223_v10, inf }
  0x24   : > { %487 = vadd.xlane.f32.xlu1 %v486_v55  ;;  %v260_v20 = vunpack.c.0.s8 %v259_v14  ;;  %v229_v24 = vand.u32 2147483648, %v223_v10  ;;  %vm228_vm2 = vcmp.eq.f32.partialorder %v223_v10, 0.0  ;;  %v577_v30 = vrot.slane %v952_v33, %v920_v11 }
  0x25   : > { %827 = vrsqrt.f32 %v206_v19  ;;  %vm209_vm3 = vcmp.eq.f32.partialorder %v206_v19, inf  ;;  %v212_v29 = vand.u32 2147483648, %v206_v19  ;;  %vm211_vm4 = vcmp.eq.f32.partialorder %v206_v19, 0.0 }
  0x26   : > { %v263_v22 = vsub.s32 %v260_v20, %v888_v1  ;;  %v581_v1 = vrot.slane %v952_v33, %v961_v39  ;;  %v584_v38 = vsel %vm242_vm0, %v577_v30, 0.0  ;;  %v602_v42 = vrot.slane %v924_v12, %v920_v11 }
  0x27   : > { %512 = vadd.xlane.f32.xlu0 %v511_v15  ;;  %v606_v43 = vrot.slane %v924_v12, %v961_v39 }
  0x28   : > { %537 = vadd.xlane.f32.xlu1 %v536_v16  ;;  %v264_v25 = vrot.slane %v905_v5, %v263_v22  ;;  %v585_v41 = vsel %vm242_vm0, %v581_v1, 0.0  ;;  %v609_v11 = vsel %vm242_vm0, %v602_v42, 0.0 }
  0x29   : > { %v586_v48 = vadd.f32 %v585_v41, %v584_v38  ;;  %v610_v12 = vsel %vm242_vm0, %v606_v43, 0.0 }
  0x2a   : > { %v611_v51 = vadd.f32 %v610_v12, %v609_v11 }
  0x2b   : > { %562 = vadd.xlane.f32.xlu0 %v561_v21 }
  0x2d   : > { %v826_v23 = vpop.eup %825 }
  0x2e   : > { %v225_v26 = vmul.f32 %v826_v23, %v223_v10 }
  0x2f   : > { %v828_v27 = vpop.eup %827 }
  0x30   : > { %v227_v28 = vsel %vm226_vm1, %v223_v10, %v225_v26  ;;  %v208_v32 = vmul.f32 %v828_v27, %v206_v19 }
  0x31   : > { %v230_v31 = vsel %vm228_vm2, %v229_v24, %v227_v28 }
  0x32   : > { %v293_v34 = vmul.f32 %v264_v25, %v230_v31  ;;  %v210_v35 = vsel %vm209_vm3, %v206_v19, %v208_v32 }
  0x33   : > { %v213_v37 = vsel %vm211_vm4, %v212_v29, %v210_v35 }
  0x34   : > { %v298_v36 = vrot.slane %v293_v34, %v891_v2  ;;  %v302_v5 = vrot.slane %v293_v34, %v897_v4  ;;  %v266_v40 = vmul.f32 %v264_v25, %v213_v37 }
  0x36   : > { %v305_v33 = vsel %vm242_vm0, %v298_v36, 0.0  ;;  %v306_v44 = vsel %vm242_vm0, %v302_v5, 0.0  ;;  %v271_v46 = vrot.slane %v266_v40, %v891_v2  ;;  %v275_v47 = vrot.slane %v266_v40, %v897_v4 }
  0x37   : > { %v307_v45 = vadd.f32 %v306_v44, %v305_v33 }
  0x38   : > { %v278_v49 = vsel %vm242_vm0, %v271_v46, 0.0  ;;  %v279_v50 = vsel %vm242_vm0, %v275_v47, 0.0 }
  0x39   : > { %308 = vadd.xlane.f32.xlu1 %v307_v45  ;;  %v280_v39 = vadd.f32 %v279_v50, %v278_v49 }
  0x3b   : > { %281 = vadd.xlane.f32.xlu0 %v280_v39 }
  0x3d   : > { %587 = vadd.xlane.f32.xlu1 %v586_v48 }
  0x3f   : > { %612 = vadd.xlane.f32.xlu0 %v611_v51 }
  0xa4   : > { %v247_v2 = vpop.xlane.xlu0 %246 }
  0xa5   : > { %v248_v4 = vrot.slane %v247_v2, 4  ;;  %v335_v54 = vpop.xlane.xlu1 %334 }
  0xa6   : > { %v336_v6 = vrot.slane %v335_v54, 4 }
  0xa7   : > { %v249_v52 = vadd.f32 %v248_v4, %v247_v2 }
  0xa8   : > { %v361_v55 = vpop.xlane.xlu0 %360  ;;  %v337_v7 = vadd.f32 %v336_v6, %v335_v54 }
  0xa9   : > { %v250_v53 = vrot.slane %v249_v52, 2  ;;  %v438_v59 = vpop.xlane.xlu1 %437  ;;  %v362_v3 = vrot.slane %v361_v55, 4 }
  0xaa   : > { %v439_v13 = vrot.slane %v438_v59, 4  ;;  %v338_v16 = vrot.slane %v337_v7, 2 }
  0xab   : > { %v251_v56 = vadd.f32 %v250_v53, %v249_v52  ;;  %v363_v9 = vadd.f32 %v362_v3, %v361_v55 }
  0xac   : > { %v463_v60 = vpop.xlane.xlu0 %462  ;;  %v440_v20 = vadd.f32 %v439_v13, %v438_v59  ;;  %v339_v31 = vadd.f32 %v338_v16, %v337_v7 }
  0xad   : > { %v252_v57 = vrot.slane %v251_v56, 1  ;;  %v388_v61 = vpop.xlane.xlu1 %387  ;;  %v464_v18 = vrot.slane %v463_v60, 4  ;;  %v364_v23 = vrot.slane %v363_v9, 2 }
  0xae   : > { %v389_v14 = vrot.slane %v388_v61, 4  ;;  %v441_v36 = vrot.slane %v440_v20, 2  ;;  %v340_v4 = vrot.slane %v339_v31, 1 }
  0xaf   : > { %v253_v58 = vadd.f32 %v252_v57, %v251_v56  ;;  %v465_v32 = vadd.f32 %v464_v18, %v463_v60  ;;  %v365_v33 = vadd.f32 %v364_v23, %v363_v9 }
  0xb0   : > { %v413_v62 = vpop.xlane.xlu0 %412  ;;  %v390_v21 = vadd.f32 %v389_v14, %v388_v61  ;;  %v442_v53 = vadd.f32 %v441_v36, %v440_v20 }
  0xb1   : > { %778 = vpush %v253_v58  ;;  %v488_v63 = vpop.xlane.xlu1 %487  ;;  %v414_v15 = vrot.slane %v413_v62, 4  ;;  %v466_v48 = vrot.slane %v465_v32, 2  ;;  %v366_v57 = vrot.slane %v365_v33, 1 }
  0xb2   : > { %v489_v22 = vrot.slane %v488_v63, 4  ;;  %v391_v5 = vrot.slane %v390_v21, 2 }
  0xb3   : > { %v415_v24 = vadd.f32 %v414_v15, %v413_v62  ;;  %v467_v61 = vadd.f32 %v466_v48, %v465_v32  ;;  %v367_v9 = vadd.f32 %v366_v57, %v365_v33 }
  0xb4   : > { %v513_v0 = vpop.xlane.xlu0 %512  ;;  %v490_v37 = vadd.f32 %v489_v22, %v488_v63  ;;  %v392_v51 = vadd.f32 %v391_v5, %v390_v21 }
  0xb5   : > { %v538_v8 = vpop.xlane.xlu1 %537  ;;  %v514_v25 = vrot.slane %v513_v0, 4  ;;  %v416_v40 = vrot.slane %v415_v24, 2  ;;  %v468_v15 = vrot.slane %v467_v61, 1 }
  0xb6   : > { %v539_v28 = vrot.slane %v538_v8, 4  ;;  %v491_v11 = vrot.slane %v490_v37, 2  ;;  %v393_v63 = vrot.slane %v392_v51, 1 }
  0xb7   : > { %v515_v41 = vadd.f32 %v514_v25, %v513_v0  ;;  %v417_v52 = vadd.f32 %v416_v40, %v415_v24  ;;  %v469_v24 = vadd.f32 %v468_v15, %v467_v61 }
  0xb8   : > { %v563_v10 = vpop.xlane.xlu0 %562  ;;  %v540_v44 = vadd.f32 %v539_v28, %v538_v8  ;;  %v492_v0 = vadd.f32 %v491_v11, %v490_v37  ;;  %v341_v8 = vadd.f32 %v340_v4, %v339_v31 }
  0xb9   : > { %v564_v1 = vrot.slane %v563_v10, 4  ;;  %v516_v2 = vrot.slane %v515_v41, 2  ;;  %v418_v6 = vrot.slane %v417_v52, 1 }
  0xba   : > { %v541_v54 = vrot.slane %v540_v44, 2  ;;  %v493_v18 = vrot.slane %v492_v0, 1 }
  0xbb   : > { %v565_v49 = vadd.f32 %v564_v1, %v563_v10  ;;  %v517_v3 = vadd.f32 %v516_v2, %v515_v41  ;;  %v443_v10 = vrot.slane %v442_v53, 1 }
  0xbc   : > { %v542_v13 = vadd.f32 %v541_v54, %v540_v44 }
  0xbd   : > { %v566_v58 = vrot.slane %v565_v49, 2  ;;  %v518_v20 = vrot.slane %v517_v3, 1  ;;  %v444_v21 = vadd.f32 %v443_v10, %v442_v53 }
  0xbe   : > { %v543_v22 = vrot.slane %v542_v13, 1 }
  0xbf   : > { %v567_v16 = vadd.f32 %v566_v58, %v565_v49  ;;  %v519_v28 = vadd.f32 %v518_v20, %v517_v3 }
  0xc1   : > { %v568_v25 = vrot.slane %v567_v16, 1 }
  0xc3   : > { %v569_v31 = vadd.f32 %v568_v25, %v567_v16 }
  0xc6   : > { %v309_v17 = vpop.xlane.xlu1 %308 }
  0xc7   : > { %v310_v19 = vrot.slane %v309_v17, 4 }
  0xc8   : > { %v282_v27 = vpop.xlane.xlu0 %281 }
  0xc9   : > { %v311_v26 = vadd.f32 %v310_v19, %v309_v17  ;;  %v283_v29 = vrot.slane %v282_v27, 4  ;;  %v394_v17 = vadd.f32 %v393_v63, %v392_v51  ;;  %v419_v19 = vadd.f32 %v418_v6, %v417_v52 }
  0xca   : > { %v588_v30 = vpop.xlane.xlu1 %587 }
  0xcb   : > { %v312_v34 = vrot.slane %v311_v26, 2  ;;  %v589_v35 = vrot.slane %v588_v30, 4  ;;  %v284_v38 = vadd.f32 %v283_v29, %v282_v27  ;;  %v494_v27 = vadd.f32 %v493_v18, %v492_v0 }
  0xcc   : > { %v613_v42 = vpop.xlane.xlu0 %612  ;;  %v544_v29 = vadd.f32 %v543_v22, %v542_v13 }
  0xcd   : > { %v313_v43 = vadd.f32 %v312_v34, %v311_v26  ;;  %v285_v45 = vrot.slane %v284_v38, 2  ;;  %v590_v46 = vadd.f32 %v589_v35, %v588_v30  ;;  %v614_v47 = vrot.slane %v613_v42, 4 }
  0xcf   : > { %v314_v50 = vrot.slane %v313_v43, 1  ;;  %v615_v12 = vadd.f32 %v614_v47, %v613_v42  ;;  %v286_v39 = vadd.f32 %v285_v45, %v284_v38  ;;  %v591_v55 = vrot.slane %v590_v46, 2 }
  0xd1   : > { %v287_v56 = vrot.slane %v286_v39, 1  ;;  %v616_v59 = vrot.slane %v615_v12, 2  ;;  %v315_v60 = vadd.f32 %v314_v50, %v313_v43  ;;  %v592_v7 = vadd.f32 %v591_v55, %v590_v46 }
  0xd3   : > { %v288_v62 = vadd.f32 %v287_v56, %v286_v39  ;;  %v617_v14 = vadd.f32 %v616_v59, %v615_v12  ;;  %v593_v23 = vrot.slane %v592_v7, 1 }
  0xd5   : > { %780 = vpush %v288_v62  ;;  %v618_v26 = vrot.slane %v617_v14, 1  ;;  %v594_v30 = vadd.f32 %v593_v23, %v592_v7 }
  0xd6   : > { %782 = vpush %v315_v60 }
  0xd7   : > { %784 = vpush %v341_v8  ;;  %v619_v32 = vadd.f32 %v618_v26, %v617_v14 }
  0xd8   : > { %786 = vpush %v367_v9 }
  0xd9   : > { %788 = vpush %v394_v17 }
  0xda   : > { %790 = vpush %v419_v19 }
  0xdb   : > { %792 = vpush %v444_v21 }
  0xdc   : > { %794 = vpush %v469_v24 }
  0xdd   : > { %796 = vpush %v494_v27 }
  0xde   : > { %798 = vpush %v519_v28 }
  0xdf   : > { %800 = vpush %v544_v29 }
  0xe0   : > { %802 = vpush %v569_v31 }
  0xe1   : > { %804 = vpush %v594_v30 }
  0xe2   : > { %s779_s30 = spop %778  ;;  %806 = vpush %v619_v32 }
  0xe3   : > { %257 = sst [smem:[%s1019_s27]] %s779_s30 }
 0x106   : > { %s781_s20 = spop %780 }
 0x107   : > { %292 = sst [smem:[%s671_s4]] %s781_s20  ;;  %s783_s21 = spop %782 }
 0x108   : > { %319 = sst [smem:[%s674_s5]] %s783_s21  ;;  %s785_s22 = spop %784 }
 0x109   : > { %345 = sst [smem:[%s677_s6]] %s785_s22  ;;  %s787_s23 = spop %786 }
 0x10a   : > { %371 = sst [smem:[%s680_s7]] %s787_s23  ;;  %s789_s24 = spop %788 }
 0x10b   : > { %398 = sst [smem:[%s683_s8]] %s789_s24  ;;  %s791_s25 = spop %790 }
 0x10c   : > { %423 = sst [smem:[%s686_s9]] %s791_s25  ;;  %s793_s26 = spop %792 }
 0x10d   : > { %448 = sst [smem:[%s689_s10]] %s793_s26  ;;  %s795_s28 = spop %794 }
 0x10e   : > { %473 = sst [smem:[%s692_s11]] %s795_s28  ;;  %s797_s29 = spop %796 }
 0x10f   : > { %498 = sst [smem:[%s695_s14]] %s797_s29  ;;  %s799_s30 = spop %798 }
 0x110   : > { %523 = sst [smem:[%s698_s15]] %s799_s30  ;;  %s801_s4 = spop %800 }
 0x111   : > { %548 = sst [smem:[%s701_s16]] %s801_s4  ;;  %s803_s5 = spop %802 }
 0x112   : > { %573 = sst [smem:[%s704_s17]] %s803_s5  ;;  %s805_s6 = spop %804 }
 0x113   : > { %598 = sst [smem:[%s707_s18]] %s805_s6  ;;  %s807_s7 = spop %806 }
 0x114   : > { %623 = sst [smem:[%s710_s19]] %s807_s7  ;;  %s829_s10 = scalar_lea.hbm %s1066_s3, 32 }
 0x115   : > { %p830_p5 = scmp.ne.s32.totalorder %s1066_s3, %s829_s10  ;;  %p835_p8 = scmp.lt.u32.totalorder %s829_s10, %s1066_s3 }
 0x117   : > { %p831_p6 = pnand %p830_p5, %p812_p4 }
 0x119   : > { %p832_p7 = pneg %p831_p6 }
 0x11b   : > { %p837_p9 = pnand %p835_p8, %p832_p7 }
 0x11d   : > { %840 = shalt.err (!%p837_p9)
}
 0x11e   : > { %s855_s15 = smov [#allocation2]  }
 0x11f   : > { %809 = dma.smem_to_hbm (%p812_p4), %s855_s15, 32, %s1066_s3, [#allocation3]  }
 0x120   : > { %846 = dma.done.wait (%p812_p4), [#allocation3], 32  }
 0x121   : > { %848 = vsyncadd (%p812_p4), [#allocation3], 4294967264 }
 0x122   : > { %640 = sfence }
 0x123 PF: > { %s14_s12 = sadd.s32 1, %s851_s12  }
 0x124   : > { %p11_p10 = scmp.ge.s32.totalorder %s14_s12, 4  }
 0x126   :  { %13 = sbr.rel (!%p11_p10) target bundleno = 1 (0x1), region = 81 }
 0x12d   :  { %646 = vsyncpa [#allocation3], 1 }
 0x12e   :  { %648 = vsyncpa [#allocation3 + $0x1], 1 }

</bundles_post_ra>
